<compile_context>
chip_gen: v7x
topology: tpu7x:2x2x1
jax: 0.10.0
libtpu: 0.0.40
codegen_flags: <defaults>
</compile_context>

<pallas_src>
import functools

import jax
import jax.numpy as jnp
from jax.experimental import pallas as pl
from jax.experimental.pallas import tpu as pltpu


_TARGET_TILE_BYTES = 6 * 1024 * 1024   # ~6 MiB per pipeline buffer (v7x-safe)
_VMEM_LIMIT_BYTES = 48 * 1024 * 1024   # leaves headroom inside v7x's 64 MiB VMEM
_LANES = 128


def _sublane_multiple(dtype):
    # 8 rows for f32, 16 for bf16, 32 for int8/fp8 — keeps packed layouts unmasked.
    return max(8, 32 // jnp.dtype(dtype).itemsize)


def _choose_row_tiling(rows, row_bytes, dtype):
    """Pick a row tile (multiple of the sublane tile) and the 1-D grid."""
    sub = _sublane_multiple(dtype)
    max_rows = max(sub, (_TARGET_TILE_BYTES // max(row_bytes, 1)) // sub * sub)
    if rows <= max_rows:
        return rows, (1,)                      # single full-extent block
    nblk = pl.cdiv(rows, max_rows)
    nblk = 2 * ((nblk + 1) // 2)               # even #blocks → balanced across 2 TCs
    row_tile = min(max_rows, ((pl.cdiv(rows, nblk) + sub - 1) // sub) * sub)
    return row_tile, (pl.cdiv(rows, row_tile),)


def _layernorm_kernel(x_ref, g_ref, b_ref, o_ref, *, eps, feat):
    """Generic path: features whole on the lane dim."""
    x = x_ref[...].astype(jnp.float32)                     # (R, F)
    g = g_ref[...].astype(jnp.float32)                     # (1, F)
    b = b_ref[...].astype(jnp.float32)                     # (1, F)

    # Single-pass statistics.
    s1 = jnp.sum(x, axis=-1, keepdims=True)                # (R, 1)
    s2 = jnp.sum(x * x, axis=-1, keepdims=True)            # (R, 1)
    mean = s1 * (1.0 / feat)
    # torch.Tensor.std is unbiased (N-1); eps is added to std, not to var.
    unbiased = 1.0 / (feat - 1) if feat > 1 else 1.0       # feat==1 gives NaN in torch
    var = jnp.maximum((s2 - s1 * mean) * unbiased, 0.0)
    std = jnp.sqrt(var)
    # Per-row reciprocal on the column only; full-tile op is a cheap multiply.
    inv = pl.reciprocal(std + eps, approx=False)           # (R, 1)

    y = g * ((x - mean) * inv) + b
    o_ref[...] = y.astype(o_ref.dtype)


def _layernorm_folded_kernel(x_ref, g_ref, b_ref, seg_ref, segt_ref, o_ref, *,
                             eps, feat):
    """Lane-dense small-F path: k = 128 // F logical rows per physical row.

    Segmented per-row reduce / broadcast-back via tiny one-hot matmuls (MXU).
    """
    x = x_ref[...].astype(jnp.float32)                     # (R, 128)
    g = g_ref[...].astype(jnp.float32)                     # (1, 128) gamma tiled k times
    b = b_ref[...].astype(jnp.float32)                     # (1, 128)
    seg = seg_ref[...]                                     # (128, k) one-hot segments
    segt = segt_ref[...]                                   # (k, 128)

    s1 = jnp.dot(x, seg, preferred_element_type=jnp.float32)        # (R, k)
    s2 = jnp.dot(x * x, seg, preferred_element_type=jnp.float32)    # (R, k)
    mean = s1 * (1.0 / feat)
    unbiased = 1.0 / (feat - 1) if feat > 1 else 1.0
    var = jnp.maximum((s2 - s1 * mean) * unbiased, 0.0)
    std = jnp.sqrt(var)
    inv = pl.reciprocal(std + eps, approx=False)                    # (R, k)

    # Broadcast per-logical-row stats back onto their lane segments.
    mean_b = jnp.dot(mean, segt, preferred_element_type=jnp.float32)  # (R, 128)
    inv_b = jnp.dot(inv, segt, preferred_element_type=jnp.float32)    # (R, 128)

    y = g * ((x - mean_b) * inv_b) + b
    o_ref[...] = y.astype(o_ref.dtype)


def layer_norm(x, gamma, beta, eps=1e-6):
    """LayerNorm over the last axis of `x` with affine params gamma/beta."""
    orig_shape = x.shape
    feat = orig_shape[-1]
    rows = x.size // feat
    itemsize = jnp.dtype(x.dtype).itemsize

    compiler_params = pltpu.CompilerParams(
        dimension_semantics=("parallel",),      # shards row blocks across v7x's 2 TCs
        vmem_limit_bytes=_VMEM_LIMIT_BYTES,
    )

    fold = (feat < _LANES) and (_LANES % feat == 0)
    k = _LANES // feat if fold else 1
    fold = fold and (rows % k == 0) and (rows // k) > 0

    if fold:
        # --- lane-dense small-F path ------------------------------------------
        frows = rows // k
        width = _LANES                                      # k * feat
        x2d = x.reshape(frows, width)                       # free, contiguous
        g2d = jnp.tile(gamma.reshape(-1), k).reshape(1, width)
        b2d = jnp.tile(beta.reshape(-1), k).reshape(1, width)
        lane = jnp.arange(width)
        seg = (lane[:, None] // feat == jnp.arange(k)[None, :]).astype(jnp.float32)
        segt = seg.T

        row_tile, grid = _choose_row_tiling(frows, width * itemsize, x.dtype)
        kernel = functools.partial(_layernorm_folded_kernel,
                                   eps=float(eps), feat=feat)

        out2d = pl.pallas_call(
            kernel,
            out_shape=jax.ShapeDtypeStruct((frows, width), x.dtype),
            grid_spec=pltpu.PrefetchScalarGridSpec(
                num_scalar_prefetch=0,
                grid=grid,
                in_specs=[
                    pl.BlockSpec((row_tile, width), lambda i: (i, 0)),
                    pl.BlockSpec((1, width), lambda i: (0, 0)),
                    pl.BlockSpec((1, width), lambda i: (0, 0)),
                    pl.BlockSpec((width, k), lambda i: (0, 0)),
                    pl.BlockSpec((k, width), lambda i: (0, 0)),
                ],
                out_specs=pl.BlockSpec((row_tile, width), lambda i: (i, 0)),
            ),
            compiler_params=compiler_params,
        )(x2d, g2d, b2d, seg, segt)
        return out2d.reshape(orig_shape)

    # --- generic path (fast when feat % 128 == 0) ------------------------------
    x2d = x.reshape(rows, feat)
    g2d = gamma.reshape(1, feat)
    b2d = beta.reshape(1, feat)

    row_tile, grid = _choose_row_tiling(rows, feat * itemsize, x.dtype)
    kernel = functools.partial(_layernorm_kernel, eps=float(eps), feat=feat)

    out2d = pl.pallas_call(
        kernel,
        out_shape=jax.ShapeDtypeStruct((rows, feat), x.dtype),
        grid_spec=pltpu.PrefetchScalarGridSpec(
            num_scalar_prefetch=0,
            grid=grid,
            in_specs=[
                pl.BlockSpec((row_tile, feat), lambda i: (i, 0)),
                pl.BlockSpec((1, feat), lambda i: (0, 0)),
                pl.BlockSpec((1, feat), lambda i: (0, 0)),
            ],
            out_specs=pl.BlockSpec((row_tile, feat), lambda i: (i, 0)),
        ),
        compiler_params=compiler_params,
    )(x2d, g2d, b2d)
    return out2d.reshape(orig_shape)


def _layernorm_ref(x, gamma, beta, eps):
    # Pure-JAX reference matching the PyTorch module exactly.
    xf = x.astype(jnp.float32)
    mean = xf.mean(-1, keepdims=True)
    xc = xf - mean
    var = jnp.sum(xc * xc, axis=-1, keepdims=True) / (xf.shape[-1] - 1)
    std = jnp.sqrt(var)
    return (gamma.astype(jnp.float32) * xc / (std + eps)
            + beta.astype(jnp.float32)).astype(x.dtype)


if __name__ == "__main__":
    key = jax.random.PRNGKey(0)
    kx, kg, kb, kx2 = jax.random.split(key, 4)
    eps = 1e-6

    # Small shape consistent with the module: (batch=2, seq=8, features=32).
    # F=32 exercises the lane-dense folded path (k = 128 // 32 = 4).
    B, S, F = 2, 8, 32
    x = jax.random.normal(kx, (B, S, F), dtype=jnp.float32)
    gamma = jnp.ones((F,), jnp.float32) + 0.1 * jax.random.normal(kg, (F,), jnp.float32)
    beta = jnp.zeros((F,), jnp.float32) + 0.1 * jax.random.normal(kb, (F,), jnp.float32)

    y = layer_norm(x, gamma, beta, eps=eps)
    jax.block_until_ready(y)
    y_ref = _layernorm_ref(x, gamma, beta, eps)
    assert y.shape == x.shape and y.dtype == x.dtype
    assert jnp.allclose(y, y_ref, atol=1e-5, rtol=1e-5)

    # Secondary check: F=128 exercises the generic (lane-full) path.
    F2 = 128
    x2 = jax.random.normal(kx2, (2, 8, F2), dtype=jnp.float32)
    g2 = jnp.ones((F2,), jnp.float32)
    b2 = jnp.zeros((F2,), jnp.float32)
    y2 = layer_norm(x2, g2, b2, eps=eps)
    jax.block_until_ready(y2)
    assert jnp.allclose(y2, _layernorm_ref(x2, g2, b2, eps), atol=1e-5, rtol=1e-5)

    print("KERNEL_OK")
</pallas_src>

<mosaic_0001>
module attributes {stable_mosaic.version = 11 : i64} {
  func.func @_layernorm_folded_kernel(%arg0: i32, %arg1: memref<4x128xf32, #tpu.memory_space<vmem>>, %arg2: memref<1x128xf32, #tpu.memory_space<vmem>>, %arg3: memref<1x128xf32, #tpu.memory_space<vmem>>, %arg4: memref<128x4xf32, #tpu.memory_space<vmem>>, %arg5: memref<4x128xf32, #tpu.memory_space<vmem>>, %arg6: memref<4x128xf32, #tpu.memory_space<vmem>>) attributes {dimension_semantics = [#tpu.dimension_semantics<parallel>], iteration_bounds = array<i64: 1>, scalar_prefetch = 0 : i64, scratch_operands = 0 : i64, tpu.core_type = #tpu.core_type<tc>, window_params = [{transform_indices = @transform_0, window_bounds = array<i64: 4, 128>}, {pipeline_mode = #tpu.pipeline_mode<synchronous>, transform_indices = @transform_1, window_bounds = array<i64: 1, 128>}, {pipeline_mode = #tpu.pipeline_mode<synchronous>, transform_indices = @transform_2, window_bounds = array<i64: 1, 128>}, {pipeline_mode = #tpu.pipeline_mode<synchronous>, transform_indices = @transform_3, window_bounds = array<i64: 128, 4>}, {pipeline_mode = #tpu.pipeline_mode<synchronous>, transform_indices = @transform_4, window_bounds = array<i64: 4, 128>}, {transform_indices = @transform_5, window_bounds = array<i64: 4, 128>}]} {
    %c0 = arith.constant 0 : index
    %c0_0 = arith.constant 0 : index
    %0 = vector.load %arg1[%c0, %c0_0] : memref<4x128xf32, #tpu.memory_space<vmem>>, vector<4x128xf32>
    %c0_1 = arith.constant 0 : index
    %c0_2 = arith.constant 0 : index
    %1 = vector.load %arg2[%c0_1, %c0_2] : memref<1x128xf32, #tpu.memory_space<vmem>>, vector<1x128xf32>
    %c0_3 = arith.constant 0 : index
    %c0_4 = arith.constant 0 : index
    %2 = vector.load %arg3[%c0_3, %c0_4] : memref<1x128xf32, #tpu.memory_space<vmem>>, vector<1x128xf32>
    %c0_5 = arith.constant 0 : index
    %c0_6 = arith.constant 0 : index
    %3 = vector.load %arg4[%c0_5, %c0_6] : memref<128x4xf32, #tpu.memory_space<vmem>>, vector<128x4xf32>
    %c0_7 = arith.constant 0 : index
    %c0_8 = arith.constant 0 : index
    %4 = vector.load %arg5[%c0_7, %c0_8] : memref<4x128xf32, #tpu.memory_space<vmem>>, vector<4x128xf32>
    %cst = arith.constant dense<0.000000e+00> : vector<4x4xf32>
    %5 = tpu.matmul %0, %3, %cst {dimension_numbers = #tpu.dot_dimension_numbers<[1], [0], [0], [1], [0, 0, 1, 1], [], []>} : vector<4x128xf32>, vector<128x4xf32>, vector<4x4xf32> -> vector<4x4xf32>
    %6 = arith.mulf %0, %0 : vector<4x128xf32>
    %cst_9 = arith.constant dense<0.000000e+00> : vector<4x4xf32>
    %7 = tpu.matmul %6, %3, %cst_9 {dimension_numbers = #tpu.dot_dimension_numbers<[1], [0], [0], [1], [0, 0, 1, 1], [], []>} : vector<4x128xf32>, vector<128x4xf32>, vector<4x4xf32> -> vector<4x4xf32>
    %cst_10 = arith.constant 3.125000e-02 : f32
    %8 = vector.broadcast %cst_10 : f32 to vector<4x4xf32>
    %9 = arith.mulf %5, %8 : vector<4x4xf32>
    %10 = arith.mulf %5, %9 : vector<4x4xf32>
    %11 = arith.subf %7, %10 : vector<4x4xf32>
    %cst_11 = arith.constant 0.0322580636 : f32
    %12 = vector.broadcast %cst_11 : f32 to vector<4x4xf32>
    %13 = arith.mulf %11, %12 : vector<4x4xf32>
    %cst_12 = arith.constant 0.000000e+00 : f32
    %14 = vector.broadcast %cst_12 : f32 to vector<4x4xf32>
    %15 = arith.maximumf %13, %14 : vector<4x4xf32>
    %16 = math.sqrt %15 : vector<4x4xf32>
    %cst_13 = arith.constant 9.99999997E-7 : f32
    %17 = vector.broadcast %cst_13 : f32 to vector<4x4xf32>
    %18 = arith.addf %16, %17 : vector<4x4xf32>
    %19 = tpu.reciprocal %18 : vector<4x4xf32> -> vector<4x4xf32>
    %cst_14 = arith.constant dense<0.000000e+00> : vector<4x128xf32>
    %20 = tpu.matmul %9, %4, %cst_14 {dimension_numbers = #tpu.dot_dimension_numbers<[1], [0], [0], [1], [0, 0, 1, 1], [], []>} : vector<4x4xf32>, vector<4x128xf32>, vector<4x128xf32> -> vector<4x128xf32>
    %cst_15 = arith.constant dense<0.000000e+00> : vector<4x128xf32>
    %21 = tpu.matmul %19, %4, %cst_15 {dimension_numbers = #tpu.dot_dimension_numbers<[1], [0], [0], [1], [0, 0, 1, 1], [], []>} : vector<4x4xf32>, vector<4x128xf32>, vector<4x128xf32> -> vector<4x128xf32>
    %22 = arith.subf %0, %20 : vector<4x128xf32>
    %23 = arith.mulf %22, %21 : vector<4x128xf32>
    %24 = vector.broadcast %1 : vector<1x128xf32> to vector<4x128xf32>
    %25 = arith.mulf %24, %23 : vector<4x128xf32>
    %26 = vector.broadcast %2 : vector<1x128xf32> to vector<4x128xf32>
    %27 = arith.addf %25, %26 : vector<4x128xf32>
    %c0_16 = arith.constant 0 : index
    %c0_17 = arith.constant 0 : index
    %28 = vector.load %arg6[%c0_16, %c0_17] : memref<4x128xf32, #tpu.memory_space<vmem>>, vector<4x128xf32>
    tpu.vector_store %arg6[%c0_16, %c0_17], %27 {strides = array<i32>} : memref<4x128xf32, #tpu.memory_space<vmem>>, vector<4x128xf32>,
    return
  }
  func.func @transform_0(%arg0: i32) -> (i32, i32) {
    %c0_i32 = arith.constant 0 : i32
    %c0_i32_0 = arith.constant 0 : i32
    return %arg0, %c0_i32 : i32, i32
  }
  func.func @transform_1(%arg0: i32) -> (i32, i32) {
    %c0_i32 = arith.constant 0 : i32
    %c0_i32_0 = arith.constant 0 : i32
    %c0_i32_1 = arith.constant 0 : i32
    return %c0_i32, %c0_i32_0 : i32, i32
  }
  func.func @transform_2(%arg0: i32) -> (i32, i32) {
    %c0_i32 = arith.constant 0 : i32
    %c0_i32_0 = arith.constant 0 : i32
    %c0_i32_1 = arith.constant 0 : i32
    return %c0_i32, %c0_i32_0 : i32, i32
  }
  func.func @transform_3(%arg0: i32) -> (i32, i32) {
    %c0_i32 = arith.constant 0 : i32
    %c0_i32_0 = arith.constant 0 : i32
    %c0_i32_1 = arith.constant 0 : i32
    return %c0_i32, %c0_i32_0 : i32, i32
  }
  func.func @transform_4(%arg0: i32) -> (i32, i32) {
    %c0_i32 = arith.constant 0 : i32
    %c0_i32_0 = arith.constant 0 : i32
    %c0_i32_1 = arith.constant 0 : i32
    return %c0_i32, %c0_i32_0 : i32, i32
  }
  func.func @transform_5(%arg0: i32) -> (i32, i32) {
    %c0_i32 = arith.constant 0 : i32
    %c0_i32_0 = arith.constant 0 : i32
    return %arg0, %c0_i32 : i32, i32
  }
}

</mosaic_0001>

<bundles_post_ra>
// kernel: tpu_custom_call.1
= control target key start
LH: loop header
LB: loop body
LE: loop exit
PB: predicated region body
PF: predicated region fallthrough
CT: control target
= control target key end

     0   :  { %v582_v3 = vmov 0.0|0.0   ;;  %vm583_vm0 = vmmov 0   ;;  %v584_v6 = vmov 0.0   ;;  %s694_s0 = inlined_call_operand.vmem [shape: f32[4,128], index: 0, kind: input, shape index: {}]   ;;  %s695_s1 = inlined_call_operand.vmem [shape: f32[1,128], index: 1, kind: input, shape index: {}]   ;;  %s696_s2 = inlined_call_operand.vmem [shape: f32[1,128], index: 2, kind: input, shape index: {}]   ;;  %s697_s3 = inlined_call_operand.vmem [shape: f32[128,4], index: 3, kind: input, shape index: {}]   ;;  %s698_s4 = inlined_call_operand.vmem [shape: f32[4,128], index: 4, kind: input, shape index: {}]   ;;  %s699_s5 = inlined_call_operand.hbm [shape: f32[4,128], index: 5, kind: output, shape index: {}]  }
   0x1   :  { %v24_v0 = vld [vmem:[%s697_s3] sm:$0xff]  ;;  %v25_v1 = vld [vmem:[%s697_s3 + $0x8] sm:$0xff]  ;;  %v26_v2 = vld [vmem:[%s697_s3 + $0x10] sm:$0xff]  ;;  %502 = vmatprep.subr.bf16.mxu0 %v582_v3  ;;  %526 = vmatprep.subr.bf16.mxu1 %v582_v3 }
   0x2   :  { %v503_v4 = vpack.c.bf16 %v25_v1, %v24_v0  ;;  %v27_v5 = vld [vmem:[%s697_s3 + $0x18] sm:$0xff]  ;;  %454 = vmatprep.mubr.msk.f32.mxu0 %vm583_vm0, %v584_v6  ;;  %489 = vmatprep.mubr.msk.f32.mxu1 %vm583_vm0, %v584_v6  ;;  %v28_v8 = vld [vmem:[%s697_s3 + $0x20] sm:$0xff]  ;;  %v29_v9 = vld [vmem:[%s697_s3 + $0x28] sm:$0xff] }
   0x3   :  { %v506_v7 = vpack.c.bf16 %v27_v5, %v26_v2 }
   0x4   :  { %504 = vmatpush3.bf16.msra.mxu0 %v503_v4  ;;  %528 = vmatpush3.bf16.msra.mxu1 %v503_v4 }
   0x5   :  { %505 = vmatprep.subr.bf16.mxu0 %v582_v3  ;;  %529 = vmatprep.subr.bf16.mxu1 %v582_v3 }
   0x6   :  { %10 = vsyncpa [#allocation3], 0  ;;  %v509_v10 = vpack.c.bf16 %v29_v9, %v28_v8  ;;  %v30_v11 = vld [vmem:[%s697_s3 + $0x30] sm:$0xff]  ;;  %v31_v12 = vld [vmem:[%s697_s3 + $0x38] sm:$0xff]  ;;  %vm200_vm1 = vcmask 1043456   ;;  %vm196_vm2 = vcmask 31744  }
   0x7   :  { %v512_v13 = vpack.c.bf16 %v31_v12, %v30_v11  ;;  %v32_v14 = vld [vmem:[%s697_s3 + $0x40] sm:$0xff]  ;;  %v33_v15 = vld [vmem:[%s697_s3 + $0x48] sm:$0xff]  ;;  %v34_v17 = vld [vmem:[%s697_s3 + $0x50] sm:$0xff]  ;;  %s585_s30 = smov [#allocation2]  }
   0x8   :  { %507 = vmatpush3.bf16.msra.mxu0 %v506_v7  ;;  %531 = vmatpush3.bf16.msra.mxu1 %v506_v7  ;;  %v515_v16 = vpack.c.bf16 %v33_v15, %v32_v14  ;;  %v35_v18 = vld [vmem:[%s697_s3 + $0x58] sm:$0xff]  ;;  %v36_v20 = vld [vmem:[%s697_s3 + $0x60] sm:$0xff]  ;;  %v37_v21 = vld [vmem:[%s697_s3 + $0x68] sm:$0xff]  ;;  %s370_s6 = sshll.u32 %s585_s30, 4  ;;  %s371_s6 = int_to_ptr.vmem [resolvable:$true] %s370_s6 }
   0x9   :  { %508 = vmatprep.subr.bf16.mxu0 %v582_v3  ;;  %532 = vmatprep.subr.bf16.mxu1 %v582_v3  ;;  %v518_v19 = vpack.c.bf16 %v35_v18, %v34_v17  ;;  %v521_v22 = vpack.c.bf16 %v37_v21, %v36_v20  ;;  %v38_v23 = vld [vmem:[%s697_s3 + $0x70] sm:$0xff]  ;;  %v39_v24 = vld [vmem:[%s697_s3 + $0x78] sm:$0xff]  ;;  %v21_v26 = vld [vmem:[%s694_s0] sm:$0xf]  ;;  %s558_s7 = scalar_lea.vmem %s371_s6, 64  ;;  %p563_p1 = scmp.lt.s32.totalorder %s371_s6, %s371_s6 }
   0xa   :  { %v524_v25 = vpack.c.bf16 %v39_v24, %v38_v23  ;;  %v111_v27 = vmul.f32 %v21_v26, %v21_v26  ;;  %v40_v28 = vld [vmem:[%s698_s4] sm:$0xf]  ;;  %p559_p0 = scmp.ne.s32.totalorder %s371_s6, %s558_s7  ;;  %p564_p2 = scmp.lt.s32.totalorder %s558_s7, %s558_s7 }
   0xb   :  { %v382_v48 = vld [vmem:[%s695_s1] ss:$0 sm:$0xff] }
   0xc   :  { %510 = vmatpush3.bf16.msra.mxu0 %v509_v10  ;;  %534 = vmatpush3.bf16.msra.mxu1 %v509_v10  ;;  %v383_v52 = vld [vmem:[%s696_s2] ss:$0 sm:$0xff]  ;;  %p565_p3 = por %p564_p2, %p563_p1 }
   0xd   :  { %511 = vmatprep.subr.bf16.mxu0 %v582_v3  ;;  %535 = vmatprep.subr.bf16.mxu1 %v582_v3 }
   0xe   :  { %p566_p4 = pnand %p565_p3, %p559_p0 }
  0x10   :  { %513 = vmatpush3.bf16.msra.mxu0 %v512_v13  ;;  %537 = vmatpush3.bf16.msra.mxu1 %v512_v13 }
  0x11   :  { %514 = vmatprep.subr.bf16.mxu0 %v582_v3  ;;  %538 = vmatprep.subr.bf16.mxu1 %v582_v3 }
  0x14   :  { %516 = vmatpush3.bf16.msra.mxu0 %v515_v16  ;;  %540 = vmatpush3.bf16.msra.mxu1 %v515_v16 }
  0x15   :  { %517 = vmatprep.subr.bf16.mxu0 %v582_v3  ;;  %541 = vmatprep.subr.bf16.mxu1 %v582_v3 }
  0x18   :  { %519 = vmatpush3.bf16.msra.mxu0 %v518_v19  ;;  %543 = vmatpush3.bf16.msra.mxu1 %v518_v19 }
  0x19   :  { %520 = vmatprep.subr.bf16.mxu0 %v582_v3  ;;  %544 = vmatprep.subr.bf16.mxu1 %v582_v3 }
  0x1c   :  { %522 = vmatpush3.bf16.msra.mxu0 %v521_v22  ;;  %546 = vmatpush3.bf16.msra.mxu1 %v521_v22 }
  0x1d   :  { %523 = vmatprep.subr.bf16.mxu0 %v582_v3  ;;  %547 = vmatprep.subr.bf16.mxu1 %v582_v3 }
  0x20   :  { %525 = vmatpush3.bf16.msra.mxu0 %v524_v25  ;;  %549 = vmatpush3.bf16.msra.mxu1 %v524_v25 }
  0x21   :  { %492 = vmatprep.subr.mxu0 %v584_v6  ;;  %497 = vmatprep.subr.mxu1 %v584_v6 }
  0x23   :  { %455 = vmatmul.mubr.f32.vlgmr.msra.gmra.mrb[0].mxu0 %v21_v26  ;;  %490 = vmatmul.mubr.f32.vlgmr.msra.gmra.mrb[0].mxu1 %v111_v27 }
  0x24   :  { %494 = vmatprep.mubr.msk.f32.mxu0 %vm583_vm0, %v584_v6  ;;  %499 = vmatprep.mubr.msk.f32.mxu1 %vm583_vm0, %v584_v6 }
  0x25   :  { %493 = vmatpush3.msk.msra.mxu0 %vm200_vm1, %v40_v28  ;;  %498 = vmatpush3.msk.msra.mxu1 %vm200_vm1, %v40_v28 }
  0xf6   :  { %v107_v29 = vpop.f32.mrb[0].mxu0  ;;  %v178_v30 = vpop.f32.mrb[0].mxu1 }
  0xf7   :  { %v182_v31 = vmul.f32 0.03125, %v107_v29  ;;  %v456_v32 = vpop.f32.mrb[1].mxu0  ;;  %v491_v33 = vpop.f32.mrb[1].mxu1 }
  0xf9   :  { %v183_v34 = vmul.f32 %v182_v31, %v107_v29  ;;  %495 = vmatmul.mubr.msk.f32.vlgmr.msra.gmra.mrb[2].mxu0 %vm196_vm2, %v182_v31 }
  0xfb   :  { %v184_v35 = vsub.f32 %v178_v30, %v183_v34 }
  0xfd   :  { %v185_v36 = vmul.f32 0.032258064, %v184_v35 }
  0xff   :  { %v186_v37 = vmax.f32 %v185_v36, 0.0 }
 0x101   :  { %554 = vrsqrt.f32 %v186_v37  ;;  %vm189_vm3 = vcmp.eq.f32.partialorder %v186_v37, inf  ;;  %v192_v40 = vand.u32 2147483648, %v186_v37  ;;  %vm191_vm4 = vcmp.eq.f32.partialorder %v186_v37, 0.0 }
 0x10b   :  { %v555_v38 = vpop.eup %554 }
 0x10c   :  { %v188_v39 = vmul.f32 %v555_v38, %v186_v37 }
 0x10e   :  { %v190_v41 = vsel %vm189_vm3, %v186_v37, %v188_v39 }
 0x10f   :  { %v193_v42 = vsel %vm191_vm4, %v192_v40, %v190_v41 }
 0x110   :  { %v194_v43 = vadd.f32 1e-06, %v193_v42 }
 0x112   :  { %556 = vrcp.f32 %v194_v43 }
 0x11c   :  { %v557_v44 = vpop.eup %556 }
 0x11d   :  { %500 = vmatmul.mubr.msk.f32.vlgmr.msra.gmra.mrb[2].mxu1 %vm196_vm2, %v557_v44 }
 0x1cc   :  { %v270_v45 = vpop.f32.mrb[2].mxu0 }
 0x1cd   :  { %v496_v46 = vpop.f32.mrb[3].mxu0  ;;  %v347_v47 = vsub.f32 %v21_v26, %v270_v45 }
 0x1f0   :  { %v343_v49 = vpop.f32.mrb[2].mxu1 }
 0x1f1   :  { %v348_v50 = vmul.f32 %v347_v47, %v343_v49  ;;  %v501_v51 = vpop.f32.mrb[3].mxu1 }
 0x1f3   :  { %v355_v53 = vmul.f32 %v382_v48, %v348_v50 }
 0x1f5   :  { %v362_v54 = vadd.f32 %v383_v52, %v355_v53 }
 0x1f7   :  { %363 = vst [vmem:[#allocation2] sm:$0xf] %v362_v54 }
 0x1f8   :  { %569 = shalt.err (!%p566_p4)
}
 0x1f9   :  { %s570_s9 = scalar_lea.hbm %s699_s5, 64 }
 0x1fa   :  { %p571_p5 = scmp.ne.s32.totalorder %s699_s5, %s570_s9  ;;  %p574_p6 = scmp.lt.u32.totalorder %s570_s9, %s699_s5 }
 0x1fc   :  { %p576_p7 = pnand %p574_p6, %p571_p5 }
 0x1fe   :  { %579 = shalt.err (!%p576_p7)
}
 0x1ff   :  { %373 = dma.vmem_to_hbm [thread:$0]  %s371_s6, 64, %s699_s5, [#allocation3]  }
 0x200   :  { %580 = dma.done.wait [#allocation3], 64  }
 0x201   :  { %581 = vsyncadd [#allocation3], 4294967232 }
 0x202   :  { %377 = vsyncpa [#allocation3], 1 }

</bundles_post_ra>
